<compile_context>
chip_gen: v5e
topology: v5e:2x2
jax: 0.10.0
libtpu: 0.0.40
codegen_flags: <defaults>
</compile_context>

<pallas_src>
import functools

import jax
import jax.numpy as jnp
import numpy as np
from jax.experimental import pallas as pl
from jax.experimental.pallas import tpu as pltpu

_LANE = 128             # TPU lane width (last dim of the bit/mask layout)
_ROW_ALIGN = 32         # sublane tile for the int8 mask output
_MAX_BLOCK_ROWS = 2048  # 2048*128 = 256K edges per block (~1.25 MiB of buffers)


def _round_up(x, m):
    return (x + m - 1) // m * m


# ---------------------------------------------------------------------------
# Kernel: Bernoulli edge mask via integer threshold compare.
#   `bits` are uniform random int32 (bitcast of uniform uint32); using only
#   the low 31 bits keeps every operand a non-negative int32, and
#   P(bits31 < round(p * 2^31)) == p  (resolution 2^-31).
#   mask == 1  => edge is dropped ("masked_edges")
#   mask == 0  => edge is kept    ("remaining_edges")
# ---------------------------------------------------------------------------
def _bernoulli_mask_kernel(bits_ref, mask_ref, *, threshold):
    bits31 = jnp.bitwise_and(bits_ref[...], jnp.int32(0x7FFFFFFF))
    mask_ref[...] = (bits31 < jnp.int32(threshold)).astype(jnp.int8)


def _bernoulli_mask(bits, threshold, block_rows):
    pad_rows, lane = bits.shape
    grid = (pad_rows // block_rows,)
    return pl.pallas_call(
        functools.partial(_bernoulli_mask_kernel, threshold=threshold),
        out_shape=jax.ShapeDtypeStruct((pad_rows, lane), jnp.int8),
        grid=grid,
        in_specs=[pl.BlockSpec((block_rows, lane), lambda i: (i, 0))],
        out_specs=pl.BlockSpec((block_rows, lane), lambda i: (i, 0)),
        compiler_params=pltpu.CompilerParams(
            dimension_semantics=("parallel",)),
    )(bits)


# ---------------------------------------------------------------------------
# Wrapper = Mask.forward
# ---------------------------------------------------------------------------
def mask_forward(edge_index, p, seed):
    two, E = edge_index.shape
    assert two == 2
    edge_index = edge_index.astype(jnp.int32)

    # --- lane-dense layout for the random bits / mask ----------------------
    rows = pl.cdiv(E, _LANE)
    block_rows = min(_MAX_BLOCK_ROWS, _round_up(max(rows, 1), _ROW_ALIGN))
    pad_rows = _round_up(max(rows, 1), block_rows)

    key = jax.random.PRNGKey(seed)
    bits_u32 = jax.random.bits(key, (pad_rows, _LANE), dtype=jnp.uint32)
    bits = jax.lax.bitcast_convert_type(bits_u32, jnp.int32)

    p = float(min(max(p, 0.0), 1.0))
    threshold = min(int(round(p * float(1 << 31))), (1 << 31) - 1)

    mask2d = _bernoulli_mask(bits, threshold, block_rows)
    mask = mask2d.reshape(-1)[:E] != 0              # (E,) bool, True => masked

    # --- stable compaction (emulates edge_index[:, ~mask] / [:, mask]) -----
    m = mask.astype(jnp.int32)
    n_drop = jnp.sum(m)
    n_keep = E - n_drop
    keep_pos = jnp.cumsum(1 - m) - 1                # slot among kept edges
    drop_pos = jnp.cumsum(m) - 1                    # slot among dropped edges
    dest_keep = jnp.where(mask, E, keep_pos)        # E => out-of-bounds => drop
    dest_drop = jnp.where(mask, drop_pos, E)
    remaining = jnp.full((2, E), -1, jnp.int32).at[:, dest_keep].set(
        edge_index, mode="drop")
    masked = jnp.full((2, E), -1, jnp.int32).at[:, dest_drop].set(
        edge_index, mode="drop")

    # --- to_undirected on the remaining edges (fused XLA concat) -----------
    # TODO(synk): torch_geometric.utils.to_undirected also coalesces
    # (sorts + dedups) the edge list; dynamic-size dedup has no fixed-shape
    # equivalent, so the concatenated edge list is returned instead.
    remaining_undirected = jnp.concatenate(
        [remaining, remaining[::-1, :]], axis=1)

    return remaining_undirected, masked, mask, n_keep, n_drop


if __name__ == "__main__":
    key = jax.random.PRNGKey(0)
    num_nodes = 32
    E = 256                                          # number of edges
    p = 0.3                                          # Mask(p=0.3)

    edge_index = jax.random.randint(key, (2, E), 0, num_nodes, dtype=jnp.int32)

    remaining_und, masked, mask, n_keep, n_drop = mask_forward(
        edge_index, p, seed=42)
    jax.block_until_ready((remaining_und, masked, mask, n_keep, n_drop))

    # --- sanity checks against a NumPy boolean-indexing reference ----------
    m_np = np.asarray(mask)
    ei_np = np.asarray(edge_index)
    nk = int(n_keep)
    nd = int(n_drop)
    assert nk + nd == E
    assert remaining_und.shape == (2, 2 * E)
    assert masked.shape == (2, E)

    ref_rem = ei_np[:, ~m_np]                        # edge_index[:, ~mask]
    ref_msk = ei_np[:, m_np]                         # edge_index[:, mask]
    out_rem = np.asarray(remaining_und)
    out_msk = np.asarray(masked)

    assert np.array_equal(out_rem[:, :nk], ref_rem)
    assert np.array_equal(out_rem[:, E:E + nk], ref_rem[::-1, :])  # reversed copy
    assert np.array_equal(out_msk[:, :nd], ref_msk)
    assert np.all(out_msk[:, nd:] == -1)             # padding columns
    assert np.all(out_rem[:, nk:E] == -1)
    assert np.all(out_rem[:, E + nk:] == -1)

    print("KERNEL_OK")
</pallas_src>

<mosaic_0001>
module attributes {stable_mosaic.version = 11 : i64} {
  func.func @_bernoulli_mask_kernel(%arg0: i32, %arg1: memref<32x128xi32, #tpu.memory_space<vmem>>, %arg2: memref<32x128xi8, #tpu.memory_space<vmem>>) attributes {dimension_semantics = [#tpu.dimension_semantics<parallel>], iteration_bounds = array<i64: 1>, scalar_prefetch = 0 : i64, scratch_operands = 0 : i64, tpu.core_type = #tpu.core_type<tc>, window_params = [{transform_indices = @transform_0, window_bounds = array<i64: 32, 128>}, {transform_indices = @transform_1, window_bounds = array<i64: 32, 128>}]} {
    %c0 = arith.constant 0 : index
    %c0_0 = arith.constant 0 : index
    %0 = vector.load %arg1[%c0, %c0_0] : memref<32x128xi32, #tpu.memory_space<vmem>>, vector<32x128xi32>
    %c2147483647_i32 = arith.constant 2147483647 : i32
    %1 = vector.broadcast %c2147483647_i32 : i32 to vector<32x128xi32>
    %2 = arith.andi %0, %1 : vector<32x128xi32>
    %c644245094_i32 = arith.constant 644245094 : i32
    %3 = vector.broadcast %c644245094_i32 : i32 to vector<32x128xi32>
    %4 = arith.cmpi slt, %2, %3 : vector<32x128xi32>
    %5 = arith.extui %4 : vector<32x128xi1> to vector<32x128xi8>
    %c0_1 = arith.constant 0 : index
    %c0_2 = arith.constant 0 : index
    %6 = vector.load %arg2[%c0_1, %c0_2] : memref<32x128xi8, #tpu.memory_space<vmem>>, vector<32x128xi8>
    tpu.vector_store %arg2[%c0_1, %c0_2], %5 {strides = array<i32>} : memref<32x128xi8, #tpu.memory_space<vmem>>, vector<32x128xi8>,
    return
  }
  func.func @transform_0(%arg0: i32) -> (i32, i32) {
    %c0_i32 = arith.constant 0 : i32
    %c0_i32_0 = arith.constant 0 : i32
    return %arg0, %c0_i32 : i32, i32
  }
  func.func @transform_1(%arg0: i32) -> (i32, i32) {
    %c0_i32 = arith.constant 0 : i32
    %c0_i32_0 = arith.constant 0 : i32
    return %arg0, %c0_i32 : i32, i32
  }
}

</mosaic_0001>

<bundles_post_ra>
// kernel: tpu_custom_call.1
= control target key start
LH: loop header
LB: loop body
LE: loop exit
PB: predicated region body
PF: predicated region fallthrough
CT: control target
= control target key end

     0   :  { %6 = vsyncpa [#allocation3], 0  ;;  %s142_s0 = inlined_call_operand.hbm [shape: s32[32,128], index: 0, kind: input, shape index: {}]   ;;  %s143_s1 = inlined_call_operand.hbm [shape: s8[32,128], index: 1, kind: output, shape index: {}]  }
   0x1   :  { %7 = vsyncpa [#allocation4], 0  ;;  %s12_s8 = sshll.u32 %s142_s0, 4  ;;  %s121_s9 = smov [#allocation2]   ;;  %s13_s8 = int_to_ptr.hbm [resolvable:$true] %s12_s8 }
   0x2   :  { %s14_s10 = sshll.u32 %s121_s9, 4  ;;  %s122_s11 = smov 128   ;;  %s15_s10 = int_to_ptr.vmem [resolvable:$true] %s14_s10 }
   0x3   :  { %s123_s12 = smov 8  }
   0x4   :  { %20 = dma.hbm_to_vmem [thread:$0]  %s13_s8, 512, %s15_s10, [#allocation3], %s122_s11, %s122_s11, %s123_s12  }
   0x5   :  { %117 = dma.done.wait [#allocation3], 512  }
   0x6   :  { %118 = vsyncadd [#allocation3], 4294966784  ;;  %v27_v0 = vld [vmem:[#allocation2] sm:$0xff]  ;;  %v28_v1 = vld [vmem:[#allocation2 + $0x8] sm:$0xff]  ;;  %v124_v8 = vmov 0   ;;  %s125_s0 = smov [#allocation5]  }
   0x7   :  { %v29_v2 = vld [vmem:[#allocation2 + $0x10] sm:$0xff]  ;;  %v30_v3 = vld [vmem:[#allocation2 + $0x18] sm:$0xff]  ;;  %v31_v4 = vand.u32 2147483647, %v27_v0  ;;  %v32_v5 = vand.u32 2147483647, %v28_v1 }
   0x8   :  { %v33_v6 = vand.u32 2147483647, %v29_v2  ;;  %v34_v7 = vand.u32 2147483647, %v30_v3  ;;  %s52_s13 = sshll.u32 %s125_s0, 4  ;;  %s54_s16 = sshll.u32 %s143_s1, 4  ;;  %s53_s13 = int_to_ptr.vmem [resolvable:$true] %s52_s13  ;;  %s55_s16 = int_to_ptr.hbm [resolvable:$true] %s54_s16 }
   0x9   :  { %vm35_vm0 = vcmp.lt.s32.totalorder %v31_v4, 644245094  ;;  %vm36_vm1 = vcmp.lt.s32.totalorder %v32_v5, 644245094 }
   0xa   :  { %vm37_vm2 = vcmp.lt.s32.totalorder %v33_v6, 644245094  ;;  %vm38_vm3 = vcmp.lt.s32.totalorder %v34_v7, 644245094  ;;  %vm39_vm4 = vmpackc.low %vm36_vm1, %vm35_vm0 }
   0xb   :  { %vm40_vm5 = vmpackc.low %vm38_vm3, %vm37_vm2  ;;  %v41_v9 = vsel %vm39_vm4, 16711935, %v124_v8 }
   0xc   :  { %v42_v10 = vsel %vm40_vm5, 16711935, %v124_v8 }
   0xd   :  { %v43_v11 = vpack.c.b8 %v42_v10, %v41_v9 }
   0xf   :  { %vm44_vm6 = vnez %v43_v11 }
  0x10   :  { %v45_v12 = vsel %vm44_vm6, 16843009, %v124_v8 }
  0x11   :  { %46 = vst [vmem:[#allocation5] sm:$0xff] %v45_v12 }
  0x12   :  { %57 = dma.vmem_to_hbm [thread:$0]  %s53_s13, 128, %s55_s16, [#allocation4]  }
  0x13   :  { %119 = dma.done.wait [#allocation4], 128  }
  0x14   :  { %120 = vsyncadd [#allocation4], 4294967168 }
  0x15   :  { %62 = vsyncpa [#allocation3], 1 }
  0x16   :  { %63 = vsyncpa [#allocation4], 1 }

</bundles_post_ra>
